<compile_context>
chip_gen: v5e
topology: v5e:2x2
jax: 0.10.0
libtpu: 0.0.40
codegen_flags: <defaults>
</compile_context>

<pallas_src>
import jax
import jax.numpy as jnp
from jax.experimental import pallas as pl
from jax.experimental.pallas import tpu as pltpu

_EPS = 1e-12


def _pow_int(x, order):
    """x ** order; small integer orders unrolled as multiplies (VPU-friendly)."""
    if isinstance(order, int) and order >= 1:
        y = x
        for _ in range(order - 1):
            y = y * x
        return y
    return jnp.power(x, float(order))


def _make_fv_kernel(*, n_frames, d_valid, blk_d, order, reduction, has_weight,
                    loss_weight, use_roll, lane_padded):
    """Kernel body. Blocks are 2-D (frames, lanes); batch dim is squeezed."""
    # The roll fast path is only safe when no row alignment with weight/output
    # is required (see header comment).
    assert not (use_roll and (has_weight or reduction == 'none'))

    def kernel(*refs):
        if has_weight:
            pred_ref, target_ref, w_ref, out_ref = refs
        else:
            pred_ref, target_ref, out_ref = refs
            w_ref = None

        p = pred_ref[...].astype(jnp.float32)        # (n_frames, blk_d)
        t = target_ref[...].astype(jnp.float32)

        if use_roll:
            # Temporal diff over the FULL block via an XLU sublane rotation
            # (co-issues with VPU / hidden under DMA; avoids sublane-unaligned
            # slices). The row carrying the wrap-around pair is masked below.
            def tdiff(x):
                return pltpu.roll(x, shift=n_frames - 1, axis=0) - x
        else:
            def tdiff(x):
                return x[1:, :] - x[:-1, :]

        if order == 1:
            # (dp - dt) == tdiff(p - t) when order == 1: one shift, one subtract.
            d = tdiff(p - t)
        else:
            d = _pow_int(tdiff(p), order) - _pow_int(tdiff(t), order)

        elt = jnp.sqrt(d * d + _EPS)                 # Charbonnier, f32

        if reduction == 'none':
            if has_weight:
                elt = elt * w_ref[...].astype(jnp.float32)
            out_ref[...] = (loss_weight * elt).astype(out_ref.dtype)
            return

        # 'mean' / 'sum': one f32 partial sum per grid step (reduced in wrapper).
        if has_weight:
            # weight is zero on padded lanes -> also masks lane padding.
            elt = elt * w_ref[...].astype(jnp.float32)
        else:
            keep = None
            if use_roll:
                # Mask the single wrapped row. Built from a rolled iota so the
                # mask is independent of the hardware rotation direction.
                rows = jax.lax.broadcasted_iota(jnp.int32, elt.shape, 0)
                rolled = pltpu.roll(rows, shift=n_frames - 1, axis=0)
                keep = jnp.abs(rolled - rows) == 1
            if lane_padded:
                lane0 = pl.program_id(1) * blk_d
                lanes = lane0 + jax.lax.broadcasted_iota(jnp.int32, elt.shape, 1)
                lmask = lanes < d_valid
                keep = lmask if keep is None else jnp.logical_and(keep, lmask)
            if keep is not None:
                elt = jnp.where(keep, elt, 0.0)

        out_ref[...] = jnp.sum(elt).reshape(1, 1, 1, 1)

    return kernel


def _vmem_capacity_bytes():
    try:
        info = pltpu.get_tpu_info()
        cap = getattr(info, 'vmem_capacity_bytes', None)
        if cap:
            return int(cap)
    except Exception:
        pass
    return 64 << 20      # conservative (v7x-class) fallback


def _round_up(x, m):
    return ((x + m - 1) // m) * m


def _plan_tiles(b, n, d, itemsize, has_weight, reduction, out_itemsize):
    """Pick lane-block size, padded lane extent, lane-grid and VMEM limit."""
    vmem_cap = _vmem_capacity_bytes()
    if vmem_cap <= (64 << 20):          # v7x-class (64 MiB VMEM per core)
        vmem_limit = 40 << 20
        budget = 22 << 20
    else:                               # v5e / v6e (128 MiB VMEM)
        vmem_limit = 96 << 20
        budget = 40 << 20

    # Bytes per lane column per grid step:
    #   2 inputs x 2 pipeline buffers x n frames (native dtype)
    #   + weight / 'none' output blocks (double buffered)
    #   + ~5 live f32 temporaries of n frames inside the kernel.
    per_lane = 2 * 2 * n * itemsize
    if has_weight:
        per_lane += 2 * (n - 1) * itemsize
    if reduction == 'none':
        per_lane += 2 * (n - 1) * out_itemsize
    per_lane += 5 * n * 4

    d128 = _round_up(d, 128)
    max_lanes = max(128, (budget // per_lane) // 128 * 128)
    gd = max(1, -(-d128 // max_lanes))            # ceil-div
    if b == 1 and gd == 1 and d128 >= 256:
        gd = 2                                     # >=2 parallel steps for v7x megacore
    blk_d = _round_up(-(-d128 // gd), 128)         # even, 128-aligned split
    d_pad = gd * blk_d
    return blk_d, d_pad, gd, vmem_limit


def frame_variation_loss(pred, target, weight=None, *, loss_weight=1.0,
                         reduction='mean', order=1, with_wmap=False, ksize=7):
    if reduction not in ('none', 'mean', 'sum'):
        raise ValueError(f'Unsupported reduction mode: {reduction}')
    if with_wmap:
        # TODO(synk): cal_weight_map_wout_ema_result source not provided.
        raise NotImplementedError('with_wmap=True path is not implemented')

    b, n, c, h, w = target.shape
    if n < 2:
        raise ValueError('FrameVariationLoss requires at least 2 frames (T >= 2)')
    d = c * h * w

    has_weight = weight is not None
    itemsize = jnp.dtype(pred.dtype).itemsize
    out_itemsize = itemsize

    blk_d, d_pad, gd, vmem_limit = _plan_tiles(
        b, n, d, itemsize, has_weight, reduction, out_itemsize)
    lane_padded = d_pad != d

    # Free, contiguous reshapes; inputs stay in native dtype (no wrapper upcast).
    pred_f = pred.reshape(b, n, d)
    target_f = target.reshape(b, n, d)
    if lane_padded:
        pad = ((0, 0), (0, 0), (0, d_pad - d))
        pred_k = jnp.pad(pred_f, pad)
        target_k = jnp.pad(target_f, pad)
    else:
        pred_k, target_k = pred_f, target_f
    if has_weight:
        weight_f = weight.reshape(b, n - 1, d)
        weight_k = (jnp.pad(weight_f, ((0, 0), (0, 0), (0, d_pad - d)))
                    if lane_padded else weight_f)

    use_roll = (reduction != 'none') and (not has_weight) and (n % 8 == 0)

    frame_spec = pl.BlockSpec((None, n, blk_d), lambda i, j: (i, 0, j))
    diff_spec = pl.BlockSpec((None, n - 1, blk_d), lambda i, j: (i, 0, j))

    inputs = [pred_k, target_k]
    in_specs = [frame_spec, frame_spec]
    if has_weight:
        inputs.append(weight_k)
        in_specs.append(diff_spec)

    if reduction == 'none':
        out_shape = jax.ShapeDtypeStruct((b, n - 1, d_pad), pred.dtype)
        out_spec = diff_spec
        out_bytes = b * (n - 1) * d_pad * out_itemsize
    else:
        out_shape = jax.ShapeDtypeStruct((b, gd, 1, 1), jnp.float32)
        out_spec = pl.BlockSpec((1, 1, 1, 1), lambda i, j: (i, j, 0, 0))
        out_bytes = b * gd * 4

    elems = b * (n - 1) * d
    in_bytes = 2 * b * n * d_pad * itemsize
    if has_weight:
        in_bytes += b * (n - 1) * d_pad * jnp.dtype(weight.dtype).itemsize
    cost = pl.CostEstimate(flops=8 * elems, transcendentals=elems,
                           bytes_accessed=int(in_bytes + out_bytes))

    kernel = _make_fv_kernel(
        n_frames=n, d_valid=d, blk_d=blk_d, order=order, reduction=reduction,
        has_weight=has_weight, loss_weight=float(loss_weight),
        use_roll=use_roll, lane_padded=lane_padded)

    out = pl.pallas_call(
        kernel,
        out_shape=out_shape,
        grid=(b, gd),
        in_specs=in_specs,
        out_specs=out_spec,
        compiler_params=pltpu.CompilerParams(
            dimension_semantics=("parallel", "parallel"),
            vmem_limit_bytes=int(vmem_limit)),
        cost_estimate=cost,
    )(*inputs)

    if reduction == 'none':
        if lane_padded:
            out = out[:, :, :d]
        return out.reshape(b, n - 1, c, h, w)   # loss_weight applied in-kernel

    total = jnp.sum(out)
    if reduction == 'mean':
        if has_weight:
            # basicsr weight_reduce_loss: mean == sum / weight.sum() for full
            # element-wise weights (weight.size(1) > 1).
            total = total / jnp.sum(weight_f.astype(jnp.float32))
        else:
            total = total / float(b * (n - 1) * d)
    return loss_weight * total


# ----------------------------- pure-JAX reference ---------------------------

def _ref_loss(pred, target, weight=None, loss_weight=1.0,
              reduction='mean', order=1):
    p = pred.astype(jnp.float32)
    t = target.astype(jnp.float32)
    dp = _pow_int(p[:, 1:] - p[:, :-1], order)
    dt = _pow_int(t[:, 1:] - t[:, :-1], order)
    elt = jnp.sqrt((dp - dt) ** 2 + _EPS)
    if weight is not None:
        elt = elt * weight.astype(jnp.float32)
    if reduction == 'none':
        return loss_weight * elt
    s = jnp.sum(elt)
    if reduction == 'mean':
        denom = (jnp.sum(weight.astype(jnp.float32)) if weight is not None
                 else float(elt.size))
        s = s / denom
    return loss_weight * s


if __name__ == "__main__":
    key = jax.random.PRNGKey(0)
    k1, k2, k3, k4, k5 = jax.random.split(key, 5)
    N, T, C, H, W = 2, 8, 4, 16, 16           # lane axis C*H*W = 1024 (lane-dense)
    pred = jax.random.uniform(k1, (N, T, C, H, W), dtype=jnp.float32)
    target = jax.random.uniform(k2, (N, T, C, H, W), dtype=jnp.float32)
    wgt = jax.random.uniform(k3, (N, T - 1, C, H, W), dtype=jnp.float32)

    checks = []

    # default config: mean reduction, order=1, no weight  (roll fast path)
    checks.append((frame_variation_loss(pred, target),
                   _ref_loss(pred, target)))

    # element-wise output, order=2, loss_weight != 1  (slice path)
    checks.append((frame_variation_loss(pred, target, reduction='none',
                                        order=2, loss_weight=0.5),
                   _ref_loss(pred, target, reduction='none', order=2,
                             loss_weight=0.5)))

    # weighted sum reduction
    checks.append((frame_variation_loss(pred, target, weight=wgt,
                                        reduction='sum'),
                   _ref_loss(pred, target, weight=wgt, reduction='sum')))

    # weighted mean (basicsr weight_reduce_loss denominator)
    checks.append((frame_variation_loss(pred, target, weight=wgt,
                                        reduction='mean'),
                   _ref_loss(pred, target, weight=wgt, reduction='mean')))

    # batch=1, non-128-multiple C*H*W: exercises lane padding + forced 2-step grid
    p1 = jax.random.uniform(k4, (1, T, 3, 10, 10), dtype=jnp.float32)
    t1 = jax.random.uniform(k5, (1, T, 3, 10, 10), dtype=jnp.float32)
    checks.append((frame_variation_loss(p1, t1), _ref_loss(p1, t1)))

    ok = True
    for got, ref in checks:
        got = jax.block_until_ready(got)
        ref = jax.block_until_ready(ref)
        if not bool(jnp.allclose(got, ref, rtol=1e-4, atol=1e-5)):
            ok = False

    if not ok:
        raise SystemExit("KERNEL_MISMATCH")
    print("KERNEL_OK")
</pallas_src>

<mosaic_0001>
module attributes {stable_mosaic.version = 11 : i64} {
  func.func @kernel(%arg0: i32, %arg1: i32, %arg2: memref<1x8x1024xf32, #tpu.memory_space<vmem>>, %arg3: memref<1x8x1024xf32, #tpu.memory_space<vmem>>, %arg4: memref<1x1x1x1xf32, #tpu.memory_space<vmem>>) attributes {dimension_semantics = [#tpu.dimension_semantics<parallel>, #tpu.dimension_semantics<parallel>], iteration_bounds = array<i64: 2, 1>, scalar_prefetch = 0 : i64, scratch_operands = 0 : i64, tpu.core_type = #tpu.core_type<tc>, window_params = [{transform_indices = @transform_0, window_bounds = array<i64: 1, 8, 1024>}, {transform_indices = @transform_1, window_bounds = array<i64: 1, 8, 1024>}, {transform_indices = @transform_2, window_bounds = array<i64: 1, 1, 1, 1>}]} {
    %c0 = arith.constant 0 : index
    %c0_0 = arith.constant 0 : index
    %c0_1 = arith.constant 0 : index
    %0 = vector.load %arg2[%c0, %c0_0, %c0_1] : memref<1x8x1024xf32, #tpu.memory_space<vmem>>, vector<1x8x1024xf32>
    %1 = vector.shape_cast %0 : vector<1x8x1024xf32> to vector<8x1024xf32>
    %c0_2 = arith.constant 0 : index
    %c0_3 = arith.constant 0 : index
    %c0_4 = arith.constant 0 : index
    %2 = vector.load %arg3[%c0_2, %c0_3, %c0_4] : memref<1x8x1024xf32, #tpu.memory_space<vmem>>, vector<1x8x1024xf32>
    %3 = vector.shape_cast %2 : vector<1x8x1024xf32> to vector<8x1024xf32>
    %4 = arith.subf %1, %3 : vector<8x1024xf32>
    %c7_i32 = arith.constant 7 : i32
    %5 = tpu.dynamic_rotate %4 by %c7_i32 dim 0 : vector<8x1024xf32>, i32 -> vector<8x1024xf32>
    %6 = arith.subf %5, %4 : vector<8x1024xf32>
    %7 = arith.mulf %6, %6 : vector<8x1024xf32>
    %cst = arith.constant 9.99999996E-13 : f32
    %8 = vector.broadcast %cst : f32 to vector<8x1024xf32>
    %9 = arith.addf %7, %8 : vector<8x1024xf32>
    %10 = math.sqrt %9 : vector<8x1024xf32>
    %11 = tpu.iota {dimensions = array<i32: 0>} : vector<8x1024xi32>
    %c7_i32_5 = arith.constant 7 : i32
    %12 = tpu.dynamic_rotate %11 by %c7_i32_5 dim 0 : vector<8x1024xi32>, i32 -> vector<8x1024xi32>
    %13 = arith.subi %12, %11 : vector<8x1024xi32>
    %14 = math.absi %13 : vector<8x1024xi32>
    %c1_i32 = arith.constant 1 : i32
    %15 = vector.broadcast %c1_i32 : i32 to vector<8x1024xi32>
    %16 = arith.cmpi eq, %14, %15 : vector<8x1024xi32>
    %cst_6 = arith.constant 0.000000e+00 : f32
    %17 = vector.broadcast %cst_6 : f32 to vector<8x1024xf32>
    %18 = arith.select %16, %10, %17 : vector<8x1024xi1>, vector<8x1024xf32>
    %19 = vector.shape_cast %18 : vector<8x1024xf32> to vector<1x8x1024xf32>
    %cst_7 = arith.constant dense<0.000000e+00> : vector<1xf32>
    %20 = vector.multi_reduction <add>, %19, %cst_7 [1, 2] : vector<1x8x1024xf32> to vector<1xf32>
    %21 = vector.shape_cast %20 : vector<1xf32> to vector<1x1x1xf32>
    %22 = vector.extract %21[0, 0, 0] : f32 from vector<1x1x1xf32>
    %23 = vector.broadcast %22 : f32 to vector<1x1x1x1xf32>
    %c0_8 = arith.constant 0 : index
    %c0_9 = arith.constant 0 : index
    %c0_10 = arith.constant 0 : index
    %c0_11 = arith.constant 0 : index
    %24 = vector.load %arg4[%c0_8, %c0_9, %c0_10, %c0_11] : memref<1x1x1x1xf32, #tpu.memory_space<vmem>>, vector<1x1x1x1xf32>
    tpu.vector_store %arg4[%c0_8, %c0_9, %c0_10, %c0_11], %23 {strides = array<i32>} : memref<1x1x1x1xf32, #tpu.memory_space<vmem>>, vector<1x1x1x1xf32>,
    return
  }
  func.func @transform_0(%arg0: i32, %arg1: i32) -> (i32, i32, i32) {
    %c0_i32 = arith.constant 0 : i32
    %c0_i32_0 = arith.constant 0 : i32
    return %arg0, %c0_i32, %arg1 : i32, i32, i32
  }
  func.func @transform_1(%arg0: i32, %arg1: i32) -> (i32, i32, i32) {
    %c0_i32 = arith.constant 0 : i32
    %c0_i32_0 = arith.constant 0 : i32
    return %arg0, %c0_i32, %arg1 : i32, i32, i32
  }
  func.func @transform_2(%arg0: i32, %arg1: i32) -> (i32, i32, i32, i32) {
    %c0_i32 = arith.constant 0 : i32
    %c0_i32_0 = arith.constant 0 : i32
    %c0_i32_1 = arith.constant 0 : i32
    return %arg0, %arg1, %c0_i32, %c0_i32_0 : i32, i32, i32, i32
  }
}

</mosaic_0001>

<bundles_post_ra>
// kernel: tpu_custom_call.1
= control target key start
LH: loop header
LB: loop body
LE: loop exit
PB: predicated region body
PF: predicated region fallthrough
CT: control target
= control target key end

     0   :  { %7 = vsyncpa [#allocation3], 0  ;;  %s955_s0 = inlined_call_operand.hbm [shape: f32[2,8,1024], index: 0, kind: input, shape index: {}]   ;;  %s956_s1 = inlined_call_operand.hbm [shape: f32[2,8,1024], index: 1, kind: input, shape index: {}]   ;;  %s957_s2 = inlined_call_operand.vmem [shape: f32[2,1,1,1], index: 2, kind: output, shape index: {}]  }
   0x1   :  { %9 = vsyncpa [#allocation3 + $0x1], 0 }
   0x2   :  { %10 = vsyncpa [#allocation5], 0 }
   0x3   :  { %12 = vsyncpa [#allocation5 + $0x1], 0  ;;  %s749_s9 = smov 0   ;;  %s751_s10 = smov 0  }
   0x4   :  { %s753_s11 = smov 0   ;;  %s755_s12 = smov 0  }
   0x5   :  { %s757_s13 = smov 0   ;;  %s759_s14 = smov 0  }
   0x6 LB: > { %s523_s15 = sadd.s32 4294967295, %s732_s14   ;;  %s30_s16 = sadd.s32 1, %s728_s13  ;;  %s732_s14 = sphi %s759_s14, %s18_s14   ;;  %s728_s13 = sphi %s757_s13, %s964_s13   ;;  %s724_s12 = sphi %s755_s12, %s963_s12   ;;  %s720_s11 = sphi %s753_s11, %s962_s11   ;;  %s716_s10 = sphi %s751_s10, %s961_s10   ;;  %s712_s9 = sphi %s749_s9, %s960_s9  }
   0x7   : > { %p32_p0 = scmp.ge.s32.totalorder %s30_s16, 2  ;;  %s39_s17 = sadd.s32 1, %s720_s11 }
   0x8   : > { %p46_p1 = scmp.ne.s32.totalorder %s720_s11, %s716_s10  ;;  %p47_p2 = scmp.eq.s32.totalorder %s732_s14, 0 }
   0x9   : > { %s966_s16 = smov (%p32_p0, %s30_s16), 0  ;;  %p52_p4 = scmp.ne.s32.totalorder %s716_s10, %s712_s9 }
   0xa   : > { %p785_p3 = por %p47_p2, %p46_p1  ;;  %s34_s19 = ssub.s32 %s728_s13, %s966_s16 }
   0xb   : > { %p53_p5 = scmp.eq.s32.totalorder %s523_s15, 0  ;;  %p37_p6 = scmp.eq.s32.totalorder %s34_s19, 0 }
   0xc   : > { %p553_p8 = scmp.lt.s32.totalorder %s732_s14, 2  ;;  %s132_s22 = sand.u32 1, %s720_s11  }
   0xd   : > { %p792_p7 = por %p53_p5, %p52_p4  ;;  %s538_s23 = sshll.u32 %s728_s13, 6 }
   0xe   : > { %s798_s21 = scalar_select %p37_p6, %s720_s11, %s39_s17  }
   0xf   : > { %s527_s24 = sshll.u32 %s132_s22, 6  ;;  %s143_s27 = scalar_lea.hbm %s955_s0, %s538_s23 }
  0x10   : > { %s145_s28 = sshll.u32 %s143_s27, 4  ;;  %s136_s29 = scalar_lea.vmem [#allocation2], %s527_s24  ;;  %s146_s28 = int_to_ptr.hbm [resolvable:$true] %s145_s28 }
  0x11   : > { %s147_s30 = sshll.u32 %s136_s29, 4  ;;  %p547_p9 = pnand %p553_p8, %p785_p3  ;;  %s148_s30 = int_to_ptr.vmem [resolvable:$true] %s147_s30 }
  0x12   : > { %p533_p10 = scmp.ge.s32.totalorder %s732_s14, 1  ;;  %p174_p11 = scmp.lt.s32.totalorder %s732_s14, 3 }
  0x13   : > { %s133_s3 = scalar_lea.sflag [#allocation3], %s132_s22  ;;  %s165_s6 = scalar_lea.hbm %s956_s1, %s538_s23 }
  0x14   : > { %549 = dma.hbm_to_vmem [thread:$0]  (!%p547_p9), %s146_s28, 1024, %s148_s30, %s133_s3  }
  0x15   : > { %p175_p12 = pnand %p533_p10, %p174_p11  ;;  %s167_s7 = sshll.u32 %s165_s6, 4  ;;  %s168_s7 = int_to_ptr.hbm [resolvable:$true] %s167_s7 }
  0x16   : > { %s158_s8 = scalar_lea.vmem [#allocation4], %s527_s24  ;;  %s155_s15 = scalar_lea.sflag [#allocation5], %s132_s22 }
  0x17   : > { %s169_s9 = sshll.u32 %s158_s8, 4  ;;  %178 = sbr.rel (%p175_p12) target bundleno = 265 (0x109), region = 28  ;;  %s170_s9 = int_to_ptr.vmem [resolvable:$true] %s169_s9 }
  0x18   : > { %552 = dma.hbm_to_vmem [thread:$0]  (!%p547_p9), %s168_s7, 1024, %s170_s9, %s155_s15  }
  0x19   : > { %s180_s17 = sand.u32 (!%p175_p12), 1, %s716_s10  }
  0x1a   : > { %s534_s18 = sshll.u32 (!%p175_p12), %s180_s17, 6  ;;  %s181_s19 = scalar_lea.sflag (!%p175_p12), [#allocation3], %s180_s17 }
  0x1b   : > { %s184_s25 = scalar_lea.vmem (!%p175_p12), [#allocation2], %s534_s18 }
  0x1c   : > { %703 = dma.done.wait (%p792_p7), %s181_s19, 1024  }
  0x1d   : > { %705 = vsyncadd (%p792_p7), %s181_s19, 4294966272  ;;  %s191_s23 = scalar_lea.sflag [#allocation5], %s180_s17  ;;  %s194_s24 = scalar_lea.vmem [#allocation4], %s534_s18 }
  0x1e   : > { %707 = dma.done.wait (%p792_p7), %s191_s23, 1024  }
  0x1f   : > { %709 = vsyncadd (%p792_p7), %s191_s23, 4294966272  ;;  %v382_v0 = vlaneseq  ;;  %v230_v1 = vld [vmem:[%s184_s25] sm:$0xff]  ;;  %v231_v2 = vld [vmem:[%s184_s25 + $0x8] sm:$0xff]  ;;  %p224_p13 = scmp.lt.s32.totalorder %s724_s12, 1 }
  0x20   : > { %v232_v3 = vld [vmem:[%s184_s25 + $0x10] sm:$0xff]  ;;  %v233_v5 = vld [vmem:[%s184_s25 + $0x18] sm:$0xff]  ;;  %v234_v6 = vld [vmem:[%s184_s25 + $0x20] sm:$0xff] }
  0x21   : > { %v383_v4 = vshrl.u32 %v382_v0, 7  ;;  %v235_v7 = vld [vmem:[%s184_s25 + $0x28] sm:$0xff]  ;;  %v236_v8 = vld [vmem:[%s184_s25 + $0x30] sm:$0xff]  ;;  %v237_v9 = vld [vmem:[%s184_s25 + $0x38] sm:$0xff]  ;;  %s968_s12 = smov (!%p224_p13, %s724_s12), 1 }
  0x22   : > { %v238_v10 = vld [vmem:[%s194_s24] sm:$0xff]  ;;  %v239_v11 = vld [vmem:[%s194_s24 + $0x8] sm:$0xff]  ;;  %v240_v12 = vld [vmem:[%s194_s24 + $0x10] sm:$0xff]  ;;  %s229_s26 = scalar_lea.vmem %s957_s2, %s968_s12 }
  0x23   : > { %v241_v13 = vld [vmem:[%s194_s24 + $0x18] sm:$0xff]  ;;  %v246_v14 = vsub.f32 %v230_v1, %v238_v10  ;;  %v242_v15 = vld [vmem:[%s194_s24 + $0x20] sm:$0xff]  ;;  %v243_v16 = vld [vmem:[%s194_s24 + $0x28] sm:$0xff]  ;;  %v247_v18 = vsub.f32 %v231_v2, %v239_v11  ;;  %v248_v19 = vsub.f32 %v232_v3, %v240_v12  ;;  %v384_v21 = vrot.slane %v383_v4, 1 }
  0x24   : > { %v244_v17 = vld [vmem:[%s194_s24 + $0x30] sm:$0xff]  ;;  %v249_v20 = vsub.f32 %v233_v5, %v241_v13  ;;  %v245_v22 = vld [vmem:[%s194_s24 + $0x38] sm:$0xff]  ;;  %v250_v23 = vsub.f32 %v234_v6, %v242_v15  ;;  %v251_v24 = vsub.f32 %v235_v7, %v243_v16 }
  0x25   : > { %v252_v25 = vsub.f32 %v236_v8, %v244_v17  ;;  %v254_v26 = vrot.slane %v246_v14, 1  ;;  %v253_v27 = vsub.f32 %v237_v9, %v245_v22  ;;  %v255_v28 = vrot.slane %v247_v18, 1 }
  0x26   : > { %v256_v29 = vrot.slane %v248_v19, 1  ;;  %v257_v30 = vrot.slane %v249_v20, 1  ;;  %v258_v31 = vrot.slane %v250_v23, 1  ;;  %v259_v32 = vrot.slane %v251_v24, 1 }
  0x27   : > { %v260_v33 = vrot.slane %v252_v25, 1  ;;  %v262_v34 = vsub.f32 %v254_v26, %v246_v14  ;;  %v261_v35 = vrot.slane %v253_v27, 1  ;;  %v263_v36 = vsub.f32 %v255_v28, %v247_v18 }
  0x28   : > { %v264_v37 = vsub.f32 %v256_v29, %v248_v19  ;;  %v265_v38 = vsub.f32 %v257_v30, %v249_v20  ;;  %v266_v39 = vsub.f32 %v258_v31, %v250_v23  ;;  %v267_v40 = vsub.f32 %v259_v32, %v251_v24 }
  0x29   : > { %v268_v41 = vsub.f32 %v260_v33, %v252_v25  ;;  %v270_v42 = vmul.f32 %v262_v34, %v262_v34  ;;  %v269_v43 = vsub.f32 %v261_v35, %v253_v27  ;;  %v271_v44 = vmul.f32 %v263_v36, %v263_v36 }
  0x2a   : > { %v272_v45 = vmul.f32 %v264_v37, %v264_v37  ;;  %v273_v46 = vmul.f32 %v265_v38, %v265_v38  ;;  %v274_v47 = vmul.f32 %v266_v39, %v266_v39  ;;  %v275_v48 = vmul.f32 %v267_v40, %v267_v40 }
  0x2b   : > { %v821_v49 = vadd.f32 1e-12, %v270_v42  ;;  %v276_v50 = vmul.f32 %v268_v41, %v268_v41  ;;  %v823_v51 = vadd.f32 1e-12, %v271_v44  ;;  %v277_v53 = vmul.f32 %v269_v43, %v269_v43 }
  0x2c   : > { %v825_v52 = vadd.f32 1e-12, %v272_v45  ;;  %v827_v54 = vadd.f32 1e-12, %v273_v46  ;;  %v385_v55 = vsub.s32 %v384_v21, %v383_v4  ;;  %v830_v56 = vadd.f32 1e-12, %v274_v47 }
  0x2d   : > { %602 = vrsqrt.f32 %v821_v49  ;;  %v832_v57 = vadd.f32 1e-12, %v275_v48  ;;  %v835_v58 = vadd.f32 1e-12, %v276_v50  ;;  %v838_v59 = vadd.f32 1e-12, %v277_v53 }
  0x2e   : > { %604 = vrsqrt.f32 %v823_v51  ;;  %v387_v60 = vsub.s32 0, %v385_v55  ;;  %vm386_vm0 = vcmp.lt.s32.totalorder %v385_v55, 0  ;;  %vm293_vm1 = vcmp.eq.f32.partialorder %v821_v49, inf }
  0x2f   : > { %606 = vrsqrt.f32 %v825_v52  ;;  %vm295_vm2 = vcmp.eq.f32.partialorder %v821_v49, 0.0  ;;  %v296_v5 = vand.u32 2147483648, %v821_v49  ;;  %vm305_vm3 = vcmp.eq.f32.partialorder %v823_v51, inf }
  0x30   : > { %608 = vrsqrt.f32 %v827_v54  ;;  %v846_v0 = vsel %vm386_vm0, %v387_v60, %v385_v55  ;;  %v308_v6 = vand.u32 2147483648, %v823_v51  ;;  %vm307_vm4 = vcmp.eq.f32.partialorder %v823_v51, 0.0 }
  0x31   : > { %610 = vrsqrt.f32 %v830_v56  ;;  %vm317_vm5 = vcmp.eq.f32.partialorder %v825_v52, inf  ;;  %v320_v11 = vand.u32 2147483648, %v825_v52  ;;  %vm329_vm6 = vcmp.eq.f32.partialorder %v827_v54, inf }
  0x32   : > { %612 = vrsqrt.f32 %v832_v57  ;;  %v332_v15 = vand.u32 2147483648, %v827_v54  ;;  %vm319_vm7 = vcmp.eq.f32.partialorder %v825_v52, 0.0  ;;  %vm341_vm8 = vcmp.eq.f32.partialorder %v830_v56, inf }
  0x33   : > { %v603_v61 = vpop.eup %602  ;;  %614 = vrsqrt.f32 %v835_v58  ;;  %vm389_vm9 = vcmp.eq.s32.totalorder %v846_v0, 1  ;;  %vm331_vm10 = vcmp.eq.f32.partialorder %v827_v54, 0.0  ;;  %vm343_vm11 = vcmp.eq.f32.partialorder %v830_v56, 0.0 }
  0x34   : > { %v287_v62 = vmul.f32 %v603_v61, %v821_v49  ;;  %v605_v63 = vpop.eup %604  ;;  %616 = vrsqrt.f32 %v838_v59  ;;  %vm353_vm12 = vcmp.eq.f32.partialorder %v832_v57, inf  ;;  %vm365_vm13 = vcmp.eq.f32.partialorder %v835_v58, inf }
  0x35   : > { %v607_v1 = vpop.eup %606  ;;  %v299_v3 = vmul.f32 %v605_v63, %v823_v51  ;;  %vm355_vm14 = vcmp.eq.f32.partialorder %v832_v57, 0.0  ;;  %vm377_vm15 = vcmp.eq.f32.partialorder %v838_v59, inf  ;;  %vm367_vm0 = vcmp.eq.f32.partialorder %v835_v58, 0.0 }
  0x36   : > { %v288_v2 = vmul.f32 %v603_v61, %v287_v62  ;;  %v609_v4 = vpop.eup %608  ;;  %v311_v7 = vmul.f32 %v607_v1, %v825_v52 }
  0x37   : > { %v611_v8 = vpop.eup %610  ;;  %v300_v10 = vmul.f32 %v605_v63, %v299_v3  ;;  %v323_v12 = vmul.f32 %v609_v4, %v827_v54 }
  0x38   : > { %v289_v9 = vmul.f32 0.5, %v288_v2  ;;  %v613_v13 = vpop.eup %612  ;;  %v312_v14 = vmul.f32 %v607_v1, %v311_v7  ;;  %v335_v16 = vmul.f32 %v611_v8, %v830_v56 }
  0x39   : > { %v615_v17 = vpop.eup %614  ;;  %v301_v19 = vmul.f32 0.5, %v300_v10  ;;  %v324_v20 = vmul.f32 %v609_v4, %v323_v12  ;;  %v347_v21 = vmul.f32 %v613_v13, %v832_v57 }
  0x3a   : > { %v290_v18 = vsub.f32 1.5, %v289_v9  ;;  %v617_v22 = vpop.eup %616  ;;  %v313_v23 = vmul.f32 0.5, %v312_v14  ;;  %v336_v24 = vmul.f32 %v611_v8, %v335_v16  ;;  %v359_v25 = vmul.f32 %v615_v17, %v835_v58 }
  0x3b   : > { %v302_v27 = vsub.f32 1.5, %v301_v19  ;;  %v325_v28 = vmul.f32 0.5, %v324_v20  ;;  %v348_v29 = vmul.f32 %v613_v13, %v347_v21  ;;  %v371_v33 = vmul.f32 %v617_v22, %v838_v59 }
  0x3c   : > { %v291_v26 = vmul.f32 %v603_v61, %v290_v18  ;;  %v314_v30 = vsub.f32 1.5, %v313_v23  ;;  %v337_v31 = vmul.f32 0.5, %v336_v24  ;;  %v360_v32 = vmul.f32 %v615_v17, %v359_v25 }
  0x3d   : > { %v303_v35 = vmul.f32 %v605_v63, %v302_v27  ;;  %v326_v36 = vsub.f32 1.5, %v325_v28  ;;  %v349_v37 = vmul.f32 0.5, %v348_v29  ;;  %v372_v41 = vmul.f32 %v617_v22, %v371_v33 }
  0x3e   : > { %v292_v34 = vmul.f32 %v291_v26, %v821_v49  ;;  %v315_v38 = vmul.f32 %v607_v1, %v314_v30  ;;  %v338_v39 = vsub.f32 1.5, %v337_v31  ;;  %v361_v40 = vmul.f32 0.5, %v360_v32 }
  0x3f   : > { %v304_v43 = vmul.f32 %v303_v35, %v823_v51  ;;  %v327_v44 = vmul.f32 %v609_v4, %v326_v36  ;;  %v350_v45 = vsub.f32 1.5, %v349_v37  ;;  %v373_v61 = vmul.f32 0.5, %v372_v41 }
  0x40   : > { %v294_v42 = vsel %vm293_vm1, %v821_v49, %v292_v34  ;;  %v316_v47 = vmul.f32 %v315_v38, %v825_v52  ;;  %v339_v48 = vmul.f32 %v611_v8, %v338_v39  ;;  %v362_v50 = vsub.f32 1.5, %v361_v40 }
  0x41   : > { %v297_v46 = vsel %vm295_vm2, %v296_v5, %v294_v42  ;;  %v306_v53 = vsel %vm305_vm3, %v823_v51, %v304_v43  ;;  %v328_v55 = vmul.f32 %v327_v44, %v827_v54  ;;  %v351_v60 = vmul.f32 %v613_v13, %v350_v45 }
  0x42   : > { %v309_v62 = vsel %vm307_vm4, %v308_v6, %v306_v53  ;;  %v318_v49 = vsel %vm317_vm5, %v825_v52, %v316_v47  ;;  %v340_v63 = vmul.f32 %v339_v48, %v830_v56  ;;  %v363_v1 = vmul.f32 %v615_v17, %v362_v50 }
  0x43   : > { %v330_v2 = vsel %vm329_vm6, %v827_v54, %v328_v55  ;;  %v352_v3 = vmul.f32 %v351_v60, %v832_v57  ;;  %v374_v4 = vsub.f32 1.5, %v373_v61  ;;  %v321_v51 = vsel %vm319_vm7, %v320_v11, %v318_v49 }
  0x44   : > { %v342_v5 = vsel %vm341_vm8, %v830_v56, %v340_v63  ;;  %v344_v6 = vand.u32 2147483648, %v830_v56  ;;  %v364_v7 = vmul.f32 %v363_v1, %v835_v58  ;;  %v390_v9 = vsel %vm389_vm9, %v297_v46, 0.0 }
  0x45   : > { %v375_v8 = vmul.f32 %v617_v22, %v374_v4  ;;  %v391_v10 = vsel %vm389_vm9, %v309_v62, 0.0  ;;  %v333_v52 = vsel %vm331_vm10, %v332_v15, %v330_v2  ;;  %v356_v11 = vand.u32 2147483648, %v832_v57 }
  0x46   : > { %v354_v12 = vsel %vm353_vm12, %v832_v57, %v352_v3  ;;  %v392_v14 = vsel %vm389_vm9, %v321_v51, 0.0  ;;  %v345_v16 = vsel %vm343_vm11, %v344_v6, %v342_v5  ;;  %v368_v17 = vand.u32 2147483648, %v835_v58 }
  0x47   : > { %v376_v13 = vmul.f32 %v375_v8, %v838_v59  ;;  %v398_v54 = vadd.f32 %v391_v10, %v390_v9  ;;  %v366_v15 = vsel %vm365_vm13, %v835_v58, %v364_v7  ;;  %v393_v57 = vsel %vm389_vm9, %v333_v52, 0.0 }
  0x48   : > { %v357_v18 = vsel %vm355_vm14, %v356_v11, %v354_v12  ;;  %v380_v19 = vand.u32 2147483648, %v838_v59  ;;  %vm379_vm1 = vcmp.eq.f32.partialorder %v838_v59, 0.0  ;;  %v394_v56 = vsel %vm389_vm9, %v345_v16, 0.0 }
  0x49   : > { %v399_v20 = vadd.f32 %v398_v54, %v392_v14  ;;  %v378_v21 = vsel %vm377_vm15, %v838_v59, %v376_v13  ;;  %v369_v22 = vsel %vm367_vm0, %v368_v17, %v366_v15  ;;  %v395_v24 = vsel %vm389_vm9, %v357_v18, 0.0 }
  0x4a   : > { %v381_v58 = vsel %vm379_vm1, %v380_v19, %v378_v21  ;;  %v396_v26 = vsel %vm389_vm9, %v369_v22, 0.0  ;;  %vm415_vm2 = vcmask 0  }
  0x4b   : > { %v400_v23 = vadd.f32 %v399_v20, %v393_v57  ;;  %v397_v28 = vsel %vm389_vm9, %v381_v58, 0.0 }
  0x4d   : > { %v401_v25 = vadd.f32 %v400_v23, %v394_v56 }
  0x4f   : > { %v402_v27 = vadd.f32 %v401_v25, %v395_v24 }
  0x51   : > { %v403_v59 = vadd.f32 %v402_v27, %v396_v26 }
  0x53   : > { %v404_v29 = vadd.f32 %v403_v59, %v397_v28 }
  0x55   : > { %405 = vadd.xlane.f32.xlu0 %v404_v29 }
  0xc8   : > { %v406_v30 = vpop.xlane.xlu0 %405 }
  0xc9   : > { %v407_v31 = vrot.slane %v406_v30, 4 }
  0xcb   : > { %v408_v32 = vadd.f32 %v407_v31, %v406_v30 }
  0xcd   : > { %v409_v33 = vrot.slane %v408_v32, 2 }
  0xcf   : > { %v410_v34 = vadd.f32 %v409_v33, %v408_v32 }
  0xd1   : > { %v411_v35 = vrot.slane %v410_v34, 1 }
  0xd3   : > { %v412_v36 = vadd.f32 %v411_v35, %v410_v34 }
  0xd5   : > { %540 = vpush %v412_v36 }
 0x106   : > { %s541_s27 = spop %540 }
 0x107   : > { %v414_v0 = vstv %s541_s27 }
 0x108   : > { %416 = vst.msk [vmem:[%s229_s26] sm:$0x1] %vm415_vm2, %v414_v0 }
 0x109 PF: > { %s18_s14 = sadd.s32 1, %s732_s14   ;;  %s960_s9 = smov %s716_s10 }
 0x10a   : > { %p15_p0 = scmp.ge.s32.totalorder %s18_s14, 4   ;;  %s961_s10 = smov %s720_s11 }
 0x10b   : > { %s962_s11 = smov %s798_s21  ;;  %s963_s12 = smov %s728_s13 }
 0x10c   : > { %s964_s13 = smov %s966_s16  ;;  %17 = sbr.rel (!%p15_p0) target bundleno = 6 (0x6), region = 81 }
 0x111   :  { %440 = vsyncpa [#allocation3], 1 }
 0x112   :  { %442 = vsyncpa [#allocation3 + $0x1], 1 }
 0x113   :  { %443 = vsyncpa [#allocation5], 1 }
 0x114   :  { %445 = vsyncpa [#allocation5 + $0x1], 1 }

</bundles_post_ra>
